<compile_context>
chip_gen: v6e
topology: v6e:2x2x1
jax: 0.10.0
libtpu: 0.0.40
codegen_flags: <defaults>
</compile_context>

<pallas_src>
import math

import jax
import jax.numpy as jnp
from jax.experimental import pallas as pl
from jax.experimental.pallas import tpu as pltpu


def _round_up(x: int, m: int) -> int:
    return (x + m - 1) // m * m


def _gate_kernel(x_ref, w_ref, b_ref, out_ref):
    """out = sigmoid(x @ w + bias), fully fused in VMEM.

    x_ref: (B_pad, K_total) bf16
    w_ref: (K_total, H_pad) bf16
    b_ref: (1, H_pad)       f32
    out  : (B_pad, H_pad)   out dtype
    """
    # Start the accumulator from the bias -> saves one full-tile VALU add.
    acc = jnp.broadcast_to(b_ref[...], out_ref.shape).astype(jnp.float32)
    # Single fused matmul over the concatenated feature axis; bf16 in, f32 acc.
    acc = acc + jnp.dot(x_ref[...], w_ref[...], preferred_element_type=jnp.float32)
    # Epilogue (sigmoid) in f32.
    out_ref[...] = jax.nn.sigmoid(acc).astype(out_ref.dtype)


def lstm_gate_forward(inputs, weights_t, bias, *, out_dtype=jnp.float32):
    """inputs: list of (B, D_i) arrays; weights_t: list of (D_i, H); bias: (H,)."""
    assert len(inputs) == len(weights_t)
    batch = inputs[0].shape[0]
    hidden = weights_t[0].shape[1]

    # Fuse all per-input matmuls into one: concat activations along features,
    # transposed weights along K. Cast matmul operands to bf16 (MXU-native on
    # v6e/v7x, fine as MXU input on v5e); accumulation stays f32 in-kernel.
    x_cat = jnp.concatenate([x.astype(jnp.bfloat16) for x in inputs], axis=1)
    w_cat = jnp.concatenate([w.astype(jnp.bfloat16) for w in weights_t], axis=0)
    k_total = x_cat.shape[1]

    # Lane-dense output: pad hidden up to a multiple of 128 (unmasked stores),
    # sublane-align batch to 8. Padded rows/cols are zeros and sliced off below.
    h_pad = _round_up(hidden, 128)
    b_pad = _round_up(batch, 8)

    if h_pad != hidden:
        w_cat = jnp.pad(w_cat, ((0, 0), (0, h_pad - hidden)))
        bias_p = jnp.pad(bias.astype(jnp.float32), (0, h_pad - hidden))
    else:
        bias_p = bias.astype(jnp.float32)
    if b_pad != batch:
        x_cat = jnp.pad(x_cat, ((0, b_pad - batch), (0, 0)))

    bias2d = bias_p.reshape(1, h_pad)

    out_bytes = b_pad * h_pad * jnp.dtype(out_dtype).itemsize
    cost = pl.CostEstimate(
        flops=2 * b_pad * k_total * h_pad + 2 * b_pad * h_pad,
        transcendentals=b_pad * h_pad,  # one exp per sigmoid output element
        bytes_accessed=(x_cat.size * 2 + w_cat.size * 2 + bias2d.size * 4 + out_bytes),
    )

    # Tiny problem: no grid, every operand lives whole in VMEM.
    vmem_spec = pl.BlockSpec(memory_space=pltpu.MemorySpace.VMEM)

    out_padded = pl.pallas_call(
        _gate_kernel,
        out_shape=jax.ShapeDtypeStruct((b_pad, h_pad), out_dtype),
        in_specs=[vmem_spec, vmem_spec, vmem_spec],
        out_specs=vmem_spec,
        cost_estimate=cost,
    )(x_cat, w_cat, bias2d)

    return out_padded[:batch, :hidden]


def init_params(key, input_sizes, hidden_size):
    """Deterministic parameter init mirroring nn.Linear (uniform +-1/sqrt(fan_in))
    and bias = randn(hidden)."""
    weights_t = []
    all_in_sizes = list(input_sizes) + [hidden_size]  # last linear: hidden->hidden
    for in_size in all_in_sizes:
        key, sub = jax.random.split(key)
        bound = 1.0 / math.sqrt(in_size)
        # stored already transposed: (in_size, hidden)
        w_t = jax.random.uniform(
            sub, (in_size, hidden_size), jnp.float32, minval=-bound, maxval=bound
        )
        weights_t.append(w_t)
    key, sub = jax.random.split(key)
    bias = jax.random.normal(sub, (hidden_size,), jnp.float32)
    return weights_t, bias


if __name__ == "__main__":
    key = jax.random.PRNGKey(0)

    # LSTM_gate(16, hidden_size=32): forward(x, h_prev)
    batch = 2
    input_sizes = (16,)
    hidden_size = 32

    weights_t, bias = init_params(key, input_sizes, hidden_size)

    key, kx, kh = jax.random.split(key, 3)
    x = jax.random.normal(kx, (batch, input_sizes[0]), jnp.float32)
    h = jax.random.normal(kh, (batch, hidden_size), jnp.float32)

    out = lstm_gate_forward([x, h], weights_t, bias)
    out = jax.block_until_ready(out)
    assert out.shape == (batch, hidden_size)

    # Pure-JAX reference with the same bf16-rounded matmul operands and f32
    # accumulation (matches the kernel's numerics).
    x16 = x.astype(jnp.bfloat16).astype(jnp.float32)
    h16 = h.astype(jnp.bfloat16).astype(jnp.float32)
    w0 = weights_t[0].astype(jnp.bfloat16).astype(jnp.float32)
    w1 = weights_t[1].astype(jnp.bfloat16).astype(jnp.float32)
    ref = jax.nn.sigmoid(x16 @ w0 + h16 @ w1 + bias[None, :])
    assert jnp.allclose(out, ref, atol=1e-3, rtol=1e-3)

    # Loose check against the full-f32 reference (bf16 input rounding only).
    ref_f32 = jax.nn.sigmoid(x @ weights_t[0] + h @ weights_t[1] + bias[None, :])
    assert jnp.allclose(out, ref_f32, atol=2e-2, rtol=2e-2)

    print("KERNEL_OK")
</pallas_src>

<mosaic_0001>
module attributes {stable_mosaic.version = 11 : i64} {
  func.func @_gate_kernel(%arg0: memref<8x48xbf16, #tpu.memory_space<vmem>>, %arg1: memref<48x128xbf16, #tpu.memory_space<vmem>>, %arg2: memref<1x128xf32, #tpu.memory_space<vmem>>, %arg3: memref<8x128xf32, #tpu.memory_space<vmem>>) attributes {dimension_semantics = [], scalar_prefetch = 0 : i64, scratch_operands = 0 : i64, tpu.core_type = #tpu.core_type<tc>} {
    %c0 = arith.constant 0 : index
    %c0_0 = arith.constant 0 : index
    %0 = vector.load %arg2[%c0, %c0_0] : memref<1x128xf32, #tpu.memory_space<vmem>>, vector<1x128xf32>
    %1 = vector.shape_cast %0 : vector<1x128xf32> to vector<1x128xf32>
    %2 = vector.broadcast %1 : vector<1x128xf32> to vector<8x128xf32>
    %c0_1 = arith.constant 0 : index
    %c0_2 = arith.constant 0 : index
    %3 = vector.load %arg0[%c0_1, %c0_2] : memref<8x48xbf16, #tpu.memory_space<vmem>>, vector<8x48xbf16>
    %c0_3 = arith.constant 0 : index
    %c0_4 = arith.constant 0 : index
    %4 = vector.load %arg1[%c0_3, %c0_4] : memref<48x128xbf16, #tpu.memory_space<vmem>>, vector<48x128xbf16>
    %cst = arith.constant dense<0.000000e+00> : vector<8x128xf32>
    %5 = tpu.matmul %3, %4, %cst {dimension_numbers = #tpu.dot_dimension_numbers<[1], [0], [0], [1], [0, 0, 1, 1], [], []>} : vector<8x48xbf16>, vector<48x128xbf16>, vector<8x128xf32> -> vector<8x128xf32>
    %6 = arith.addf %2, %5 : vector<8x128xf32>
    %7 = arith.negf %6 : vector<8x128xf32>
    %8 = math.exp %7 : vector<8x128xf32>
    %cst_5 = arith.constant 1.000000e+00 : f32
    %9 = vector.broadcast %cst_5 : f32 to vector<8x128xf32>
    %10 = arith.addf %9, %8 : vector<8x128xf32>
    %11 = arith.divf %9, %10 : vector<8x128xf32>
    %c0_6 = arith.constant 0 : index
    %c0_7 = arith.constant 0 : index
    %12 = vector.load %arg3[%c0_6, %c0_7] : memref<8x128xf32, #tpu.memory_space<vmem>>, vector<8x128xf32>
    tpu.vector_store %arg3[%c0_6, %c0_7], %11 {strides = array<i32>} : memref<8x128xf32, #tpu.memory_space<vmem>>, vector<8x128xf32>,
    return
  }
}

</mosaic_0001>

<bundles_post_ra>
// kernel: tpu_custom_call.1
= control target key start
LH: loop header
LB: loop body
LE: loop exit
PB: predicated region body
PF: predicated region fallthrough
CT: control target
= control target key end

     0   :  { %8 = vsyncpa [#allocation3], 0  ;;  %s281_s0 = inlined_call_operand.hbm [shape: bf16[8,48], index: 0, kind: input, shape index: {}]   ;;  %s282_s1 = inlined_call_operand.hbm [shape: bf16[48,128], index: 1, kind: input, shape index: {}]   ;;  %s283_s2 = inlined_call_operand.vmem [shape: f32[1,128], index: 2, kind: input, shape index: {}]   ;;  %s284_s3 = inlined_call_operand.hbm [shape: f32[8,128], index: 3, kind: output, shape index: {}]  }
   0x1   :  { %9 = vsyncpa [#allocation6], 0 }
   0x2   :  { %10 = vsyncpa [#allocation4], 0  ;;  %s242_s12 = smov [#allocation2]   ;;  %s243_s14 = smov [#allocation5]  }
   0x3   :  { %s17_s13 = sshll.u32 %s242_s12, 4  ;;  %s26_s15 = sshll.u32 %s243_s14, 4  ;;  %s18_s13 = int_to_ptr.vmem [resolvable:$true] %s17_s13  ;;  %s27_s15 = int_to_ptr.vmem [resolvable:$true] %s26_s15 }
   0x4   :  { %s184_s16 = scalar_lea.vmem %s18_s13, 64  ;;  %p189_p1 = scmp.lt.s32.totalorder %s18_s13, %s18_s13 }
   0x5   :  { %p185_p0 = scmp.ne.s32.totalorder %s18_s13, %s184_s16  ;;  %p190_p2 = scmp.lt.s32.totalorder %s184_s16, %s184_s16 }
   0x7   :  { %p191_p3 = por %p190_p2, %p189_p1 }
   0x9   :  { %p192_p4 = pnand %p191_p3, %p185_p0 }
   0xb   :  { %195 = shalt.err (!%p192_p4)
}
   0xc   :  { %20 = dma.hbm_to_vmem [thread:$0]  %s281_s0, 64, %s18_s13, [#allocation3]  }
   0xd   :  { %s204_s19 = scalar_lea.vmem %s27_s15, 384  ;;  %p209_p6 = scmp.lt.s32.totalorder %s27_s15, %s27_s15 }
   0xe   :  { %p205_p5 = scmp.ne.s32.totalorder %s27_s15, %s204_s19  ;;  %p210_p7 = scmp.lt.s32.totalorder %s204_s19, %s204_s19 }
  0x10   :  { %p211_p8 = por %p210_p7, %p209_p6 }
  0x12   :  { %p212_p9 = pnand %p211_p8, %p205_p5 }
  0x14   :  { %215 = shalt.err (!%p212_p9)
}
  0x15   :  { %s244_s20 = smov 64   ;;  %s245_s21 = smov 4  }
  0x16   :  { %32 = dma.hbm_to_vmem [thread:$0]  %s282_s1, 384, %s27_s15, [#allocation6], %s244_s20, %s244_s20, %s245_s21  }
  0x17   :  { %236 = dma.done.wait [#allocation3], 64  }
  0x18   :  { %237 = vsyncadd [#allocation3], 4294967232 }
  0x19   :  { %238 = dma.done.wait [#allocation6], 384  }
  0x1a   :  { %239 = vsyncadd [#allocation6], 4294966912  ;;  %v246_v0 = vmov 0.0   ;;  %vm247_vm0 = vmmov 0   ;;  %v169_v1 = vld [vmem:[#allocation5 + $0x10] sm:$0xff]   ;;  %v170_v2 = vld [vmem:[#allocation5 + $0x8] sm:$0xff]  }
  0x1b   :  { %152 = vmatprep.subr.bf16.mxu0 %v246_v0  ;;  %158 = vmatprep.mubr.msk.bf16.mxu0 %vm247_vm0, %v246_v0  ;;  %v171_v3 = vld [vmem:[#allocation5] sm:$0xff]   ;;  %v49_v4 = vld [vmem:[#allocation2] sm:$0xf]  ;;  %vm74_vm1 = vcmask 392192   ;;  %s248_s24 = smov [#allocation7]  }
  0x1c   :  { %153 = vmatpush3.bf16.msra.mxu0 %v169_v1  ;;  %v142_v5 = vld [vmem:[%s283_s2] ss:$0 sm:$0xff]  ;;  %s132_s25 = sshll.u32 %s248_s24, 4  ;;  %s133_s25 = int_to_ptr.vmem [resolvable:$true] %s132_s25 }
  0x1d   :  { %154 = vmatprep.subr.bf16.mxu0 %v246_v0  ;;  %s216_s26 = scalar_lea.vmem %s133_s25, 128  ;;  %p221_p11 = scmp.lt.s32.totalorder %s133_s25, %s133_s25 }
  0x1e   :  { %p217_p10 = scmp.ne.s32.totalorder %s133_s25, %s216_s26  ;;  %p222_p12 = scmp.lt.s32.totalorder %s216_s26, %s216_s26 }
  0x20   :  { %155 = vmatpush3.bf16.msra.mxu0 %v170_v2  ;;  %p223_p13 = por %p222_p12, %p221_p11 }
  0x21   :  { %156 = vmatprep.subr.bf16.mxu0 %v246_v0 }
  0x22   :  { %p224_p0 = pnand %p223_p13, %p217_p10 }
  0x24   :  { %157 = vmatpush3.bf16.msra.mxu0 %v171_v3 }
  0x27   :  { %159 = vmatmul.mubr.msk.bf16.vlgmr.msra.gmra.mxu0 %vm74_vm1, %v49_v4 }
  0xe7   :  { %v112_v6 = vpop.f32.mrf.mxu0 }
  0xe8   :  { %v118_v7 = vadd.f32 %v142_v5, %v112_v6 }
  0xe9   :  { %v160_v8 = vpop.f32.mrf.mxu0 }
  0xea   :  { %v147_v9 = vmul.f32 -1.442695, %v118_v7 }
  0xeb   :  { %v115_v10 = vpop.f32.mrf.mxu0 }
  0xec   :  { %172 = vpow2.f32 %v147_v9 }
  0xed   :  { %v161_v11 = vpop.f32.mrf.mxu0 }
  0xf9   :  { %v173_v12 = vpop.eup %172 }
  0xfa   :  { %v122_v13 = vadd.f32 1.0, %v173_v12 }
  0xfc   :  { %174 = vrcp.f32 %v122_v13 }
 0x109   :  { %v175_v14 = vpop.eup %174 }
 0x10a   :  { %125 = vst [vmem:[#allocation7] sm:$0xff] %v175_v14 }
 0x10b   :  { %227 = shalt.err (!%p224_p0)
}
 0x10c   :  { %135 = dma.vmem_to_hbm [thread:$0]  %s133_s25, 128, %s284_s3, [#allocation4]  }
 0x10d   :  { %240 = dma.done.wait [#allocation4], 128  }
 0x10e   :  { %241 = vsyncadd [#allocation4], 4294967168 }
 0x10f   :  { %139 = vsyncpa [#allocation3], 1 }
 0x110   :  { %140 = vsyncpa [#allocation6], 1 }
 0x111   :  { %141 = vsyncpa [#allocation4], 1 }

</bundles_post_ra>
